<compile_context>
chip_gen: v5e
topology: v5e:2x2
jax: 0.10.0
libtpu: 0.0.40
codegen_flags: <defaults>
</compile_context>

<pallas_src>
import functools
import math

import jax
import jax.numpy as jnp
from jax import lax
from jax.experimental import pallas as pl
from jax.experimental.pallas import tpu as pltpu


_VMEM_CAP = 48 << 20          # hard ceiling: safe on v7x (64 MiB/TC) and v5e/v6e
_RESIDENT_BUDGET = 36 << 20   # planning budget for stage-2 working set


def _pick_tile(n, preferred, align):
    """Largest multiple of `align` dividing `n` that is <= `preferred`.

    Falls back to `n` itself (a full-extent block dim is always legal)."""
    best = None
    t = align
    limit = min(n, preferred)
    while t <= limit:
        if n % t == 0:
            best = t
        t += align
    return best if best is not None else n


# ---------------------------------------------------------------------------
# Kernel 1: row L2-normalization, 1/sqrt(T) pre-scaling (bf16 MXU operand) and
#           the positive logits pos[b] = <zi_n[b], zj_n[b]> / T  (kept in f32).
# ---------------------------------------------------------------------------
def _prep_kernel(zi_ref, zj_ref, zs_ref, pos_ref, *, inv_temp, inv_sqrt_temp):
    eps2 = jnp.float32(1e-24)  # matches F.normalize(eps=1e-12) applied to the norm
    zi = zi_ref[...].astype(jnp.float32)
    zj = zj_ref[...].astype(jnp.float32)
    # rsqrt on the squared norm -> EUP slot, no divides.
    zi_n = zi * lax.rsqrt(jnp.maximum(jnp.sum(zi * zi, axis=1, keepdims=True), eps2))
    zj_n = zj * lax.rsqrt(jnp.maximum(jnp.sum(zj * zj, axis=1, keepdims=True), eps2))
    s = jnp.float32(inv_sqrt_temp)
    # zs layout (2, tb, D): [0] = scaled zi_n rows, [1] = scaled zj_n rows.
    # The wrapper reshapes (2, B, D) -> (N, D) (contiguous, free) to realize cat().
    zs_ref[0] = (zi_n * s).astype(zs_ref.dtype)
    zs_ref[1] = (zj_n * s).astype(zs_ref.dtype)
    pos_ref[...] = (jnp.sum(zi_n * zj_n, axis=1) * jnp.float32(inv_temp)).reshape(1, -1)


# ---------------------------------------------------------------------------
# Kernel 2a (resident RHS): whole (tm, N) sim row block per step, plain lse.
# ---------------------------------------------------------------------------
def _lse_resident_kernel(zrow_ref, zall_ref, lse_ref, *, tm):
    r = pl.program_id(0)
    # (tm, D) x (N, D) contracted on D -> (tm, N); bf16 inputs, f32 accumulation.
    s = lax.dot_general(zrow_ref[...], zall_ref[...],
                        dimension_numbers=(((1,), (1,)), ((), ())),
                        preferred_element_type=jnp.float32)
    n = s.shape[1]
    row_g = r * tm + lax.broadcasted_iota(jnp.int32, (tm, n), 0)
    col_g = lax.broadcasted_iota(jnp.int32, (tm, n), 1)
    s = jnp.where(row_g == col_g, jnp.float32(-1e30), s)
    m = jnp.max(s, axis=1, keepdims=True)
    l = jnp.sum(jnp.exp(s - m), axis=1, keepdims=True)
    lse_ref[...] = (m + jnp.log(l)).reshape(1, tm)


# ---------------------------------------------------------------------------
# Kernel 2b (tiled fallback): flash-style online masked logsumexp.
# ---------------------------------------------------------------------------
def _lse_tiled_kernel(zrow_ref, zcol_ref, lse_ref, m_scr, l_scr, *, tm, tn):
    r = pl.program_id(0)
    c = pl.program_id(1)

    @pl.when(c == 0)
    def _init():
        m_scr[...] = jnp.full(m_scr.shape, -jnp.inf, jnp.float32)
        l_scr[...] = jnp.zeros(l_scr.shape, jnp.float32)

    s = lax.dot_general(zrow_ref[...], zcol_ref[...],
                        dimension_numbers=(((1,), (1,)), ((), ())),
                        preferred_element_type=jnp.float32)

    # Diagonal (self-similarity) mask, only on tiles the diagonal actually crosses.
    overlap = jnp.logical_and(r * tm < (c + 1) * tn, c * tn < (r + 1) * tm)

    def _mask_diag(x):
        row_g = r * tm + lax.broadcasted_iota(jnp.int32, (tm, tn), 0)
        col_g = c * tn + lax.broadcasted_iota(jnp.int32, (tm, tn), 1)
        return jnp.where(row_g == col_g, jnp.float32(-1e30), x)

    s = lax.cond(overlap, _mask_diag, lambda x: x, s)

    # Online logsumexp across the column blocks.
    m_prev = m_scr[...]
    m_cur = jnp.maximum(m_prev, jnp.max(s, axis=1, keepdims=True))
    alpha = jnp.exp(m_prev - m_cur)
    l_scr[...] = alpha * l_scr[...] + jnp.sum(jnp.exp(s - m_cur), axis=1, keepdims=True)
    m_scr[...] = m_cur

    @pl.when(c == pl.num_programs(1) - 1)
    def _finalize():
        lse_ref[...] = (m_scr[...] + jnp.log(l_scr[...])).reshape(1, tm)


def instance_loss(z_i, z_j, temperature, *, force_tiled=False, block_m=None, block_n=None):
    """Pallas TPU implementation of InstanceLoss.forward(z_i, z_j)."""
    assert z_i.shape == z_j.shape and z_i.ndim == 2
    B, D = z_i.shape
    N = 2 * B
    inv_t = 1.0 / float(temperature)
    inv_sqrt_t = 1.0 / math.sqrt(float(temperature))

    # ---- stage 1: normalize / scale / positive logits ----------------------
    tb = _pick_tile(B, 512, 128) if B >= 128 else B
    prep_vmem = int(min(_VMEM_CAP, max(16 << 20, 16 * tb * D * 4)))

    zs2, pos = pl.pallas_call(
        functools.partial(_prep_kernel, inv_temp=inv_t, inv_sqrt_temp=inv_sqrt_t),
        grid=(B // tb,),
        in_specs=[pl.BlockSpec((tb, D), lambda i: (i, 0)),
                  pl.BlockSpec((tb, D), lambda i: (i, 0))],
        out_specs=[pl.BlockSpec((2, tb, D), lambda i: (0, i, 0)),
                   pl.BlockSpec((1, tb), lambda i: (0, i))],
        out_shape=[jax.ShapeDtypeStruct((2, B, D), jnp.bfloat16),
                   jax.ShapeDtypeStruct((1, B), jnp.float32)],
        compiler_params=pltpu.CompilerParams(
            dimension_semantics=("parallel",),
            vmem_limit_bytes=prep_vmem),
    )(z_i, z_j)

    zs = zs2.reshape(N, D)      # (N, D) bf16, rows = normalized z / sqrt(T); no copy

    # ---- stage 2: similarity + masked logsumexp -----------------------------
    rhs_resident_bytes = 2 * N * D * 2            # full (N, D) bf16 RHS (x2, conservative)
    per_row_resident = 2 * D * 2 + 16 * N + 8     # LHS (bf16, x2 buf) + ~4 (·,N) f32 temps + out
    min_rows = N if N < 128 else 128
    resident_ok = (not force_tiled) and (
        rhs_resident_bytes + per_row_resident * min_rows <= _RESIDENT_BUDGET)

    if resident_ok:
        tm_cap = max(min_rows, (_RESIDENT_BUDGET - rhs_resident_bytes) // per_row_resident)
        pref = min(512, tm_cap)
        if N >= 256:
            pref = min(pref, N // 2)   # >= 2 row blocks so both v7x TCs stay busy
        tm = block_m if block_m is not None else (_pick_tile(N, pref, 128) if N >= 128 else N)
        n_r = N // tm
        vmem = int(min(_VMEM_CAP, max(16 << 20,
                                      rhs_resident_bytes + per_row_resident * tm + (4 << 20))))
        lse = pl.pallas_call(
            functools.partial(_lse_resident_kernel, tm=tm),
            grid=(n_r,),
            in_specs=[pl.BlockSpec((tm, D), lambda r: (r, 0)),
                      pl.BlockSpec((N, D), lambda r: (0, 0))],   # resident: fetched once
            out_specs=pl.BlockSpec((1, tm), lambda r: (0, r)),
            out_shape=jax.ShapeDtypeStruct((1, N), jnp.float32),
            compiler_params=pltpu.CompilerParams(
                dimension_semantics=("parallel",),
                vmem_limit_bytes=vmem),
            cost_estimate=pl.CostEstimate(
                flops=2 * N * N * D,
                transcendentals=N * N,
                bytes_accessed=2 * (2 * N * D) + 4 * N),
        )(zs, zs)
    else:
        tn = block_n if block_n is not None else (_pick_tile(N, 1024, 128) if N >= 128 else N)
        fixed = 3 * tn * D * 2                        # RHS blocks (Buffered(3))
        per_row = 2 * D * 2 + 12 * tn + 24            # LHS (x2) + ~3 (·,tn) f32 temps + out/scratch
        tm_cap = max(min_rows, (_RESIDENT_BUDGET - fixed) // max(per_row, 1))
        pref = min(512, tm_cap)
        if N >= 256:
            pref = min(pref, N // 2)
        tm = block_m if block_m is not None else (_pick_tile(N, pref, 128) if N >= 128 else N)
        n_r, n_c = N // tm, N // tn

        rhs_spec = (pl.BlockSpec((tn, D), lambda r, c: (c, 0), pipeline_mode=pl.Buffered(3))
                    if n_c >= 3 else pl.BlockSpec((tn, D), lambda r, c: (c, 0)))
        vmem = int(min(_VMEM_CAP, max(16 << 20, fixed + per_row * tm + (4 << 20))))
        lse = pl.pallas_call(
            functools.partial(_lse_tiled_kernel, tm=tm, tn=tn),
            grid=(n_r, n_c),
            in_specs=[pl.BlockSpec((tm, D), lambda r, c: (r, 0)), rhs_spec],
            out_specs=pl.BlockSpec((1, tm), lambda r, c: (0, r)),
            out_shape=jax.ShapeDtypeStruct((1, N), jnp.float32),
            scratch_shapes=[pltpu.VMEM((tm, 1), jnp.float32),
                            pltpu.VMEM((tm, 1), jnp.float32)],
            compiler_params=pltpu.CompilerParams(
                dimension_semantics=("parallel", "arbitrary"),
                vmem_limit_bytes=vmem),
            cost_estimate=pl.CostEstimate(
                flops=2 * N * N * D,
                transcendentals=N * N,
                bytes_accessed=2 * N * D + 2 * n_r * N * D + 4 * N),
        )(zs, zs)

    # Final reduction (tiny): mean_k(lse_k - pos_k); each pos[b] counts twice
    # (row b uses sim[b, b+B], row b+B uses sim[b+B, b] -- identical by symmetry).
    return (jnp.sum(lse) - 2.0 * jnp.sum(pos)) / jnp.float32(N)


def _reference_instance_loss(z_i, z_j, temperature):
    # Pure-JAX reference matching the PyTorch module semantics (f32 throughout).
    B = z_i.shape[0]
    N = 2 * B
    zi = z_i / jnp.maximum(jnp.linalg.norm(z_i, axis=1, keepdims=True), 1e-12)
    zj = z_j / jnp.maximum(jnp.linalg.norm(z_j, axis=1, keepdims=True), 1e-12)
    z = jnp.concatenate([zi, zj], axis=0)
    sim = (z @ z.T) / temperature
    row = jnp.arange(N)[:, None]
    col = jnp.arange(N)[None, :]
    masked = jnp.where(row == col, -jnp.inf, sim)
    lse = jax.scipy.special.logsumexp(masked, axis=1)
    pos_mask = (col == row + B) | (col == row - B)
    pos = jnp.sum(jnp.where(pos_mask, sim, 0.0), axis=1)
    return jnp.mean(lse - pos)


if __name__ == "__main__":
    # "Parameter" of the module: temperature (deterministic init).
    temperature = 0.5

    key = jax.random.PRNGKey(0)
    k1, k2, k3, k4 = jax.random.split(key, 4)

    # bf16 MXU inputs (f32 accumulation) -> tolerance relaxed vs the old f32 path.
    TOL = 1e-2

    # 1) Small shape: full-extent blocks, resident-RHS path.
    B1, D1 = 8, 32
    zi1 = jax.random.normal(k1, (B1, D1), dtype=jnp.float32)
    zj1 = jax.random.normal(k2, (B1, D1), dtype=jnp.float32)
    out1 = jax.block_until_ready(instance_loss(zi1, zj1, temperature))
    ref1 = jax.block_until_ready(_reference_instance_loss(zi1, zj1, temperature))
    assert jnp.allclose(out1, ref1, atol=TOL, rtol=TOL), (out1, ref1)

    # 2) N multiple of 128: resident-RHS path with 2 row blocks (megacore split).
    B2, D2 = 128, 64
    zi2 = jax.random.normal(k3, (B2, D2), dtype=jnp.float32)
    zj2 = jax.random.normal(k4, (B2, D2), dtype=jnp.float32)
    out2 = jax.block_until_ready(instance_loss(zi2, zj2, temperature))
    ref2 = jax.block_until_ready(_reference_instance_loss(zi2, zj2, temperature))
    assert jnp.allclose(out2, ref2, atol=TOL, rtol=TOL), (out2, ref2)

    # 3) Same shape through the tiled online-logsumexp fallback (n_r = n_c = 2):
    #    exercises pl.when init/finalize and the guarded diagonal mask on both
    #    diagonal-crossing and off-diagonal tiles.
    out3 = jax.block_until_ready(
        instance_loss(zi2, zj2, temperature, force_tiled=True, block_m=128, block_n=128))
    assert jnp.allclose(out3, ref2, atol=TOL, rtol=TOL), (out3, ref2)

    print("KERNEL_OK")
</pallas_src>

<mosaic_0001>
module attributes {stable_mosaic.version = 11 : i64} {
  func.func @_prep_kernel(%arg0: i32, %arg1: memref<8x32xf32, #tpu.memory_space<vmem>>, %arg2: memref<8x32xf32, #tpu.memory_space<vmem>>, %arg3: memref<2x8x32xbf16, #tpu.memory_space<vmem>>, %arg4: memref<1x8xf32, #tpu.memory_space<vmem>>) attributes {dimension_semantics = [#tpu.dimension_semantics<parallel>], iteration_bounds = array<i64: 1>, scalar_prefetch = 0 : i64, scratch_operands = 0 : i64, tpu.core_type = #tpu.core_type<tc>, window_params = [{transform_indices = @transform_0, window_bounds = array<i64: 8, 32>}, {transform_indices = @transform_1, window_bounds = array<i64: 8, 32>}, {transform_indices = @transform_2, window_bounds = array<i64: 2, 8, 32>}, {transform_indices = @transform_3, window_bounds = array<i64: 1, 8>}]} {
    %c0 = arith.constant 0 : index
    %c0_0 = arith.constant 0 : index
    %0 = vector.load %arg1[%c0, %c0_0] : memref<8x32xf32, #tpu.memory_space<vmem>>, vector<8x32xf32>
    %c0_1 = arith.constant 0 : index
    %c0_2 = arith.constant 0 : index
    %1 = vector.load %arg2[%c0_1, %c0_2] : memref<8x32xf32, #tpu.memory_space<vmem>>, vector<8x32xf32>
    %2 = arith.mulf %0, %0 : vector<8x32xf32>
    %cst = arith.constant dense<0.000000e+00> : vector<8xf32>
    %3 = vector.multi_reduction <add>, %2, %cst [1] : vector<8x32xf32> to vector<8xf32>
    %4 = vector.shape_cast %3 : vector<8xf32> to vector<8x1xf32>
    %cst_3 = arith.constant 1.000000e-24 : f32
    %5 = vector.broadcast %cst_3 : f32 to vector<8x1xf32>
    %6 = arith.maximumf %4, %5 : vector<8x1xf32>
    %7 = math.rsqrt %6 : vector<8x1xf32>
    %8 = vector.broadcast %7 : vector<8x1xf32> to vector<8x32xf32>
    %9 = arith.mulf %0, %8 : vector<8x32xf32>
    %10 = arith.mulf %1, %1 : vector<8x32xf32>
    %cst_4 = arith.constant dense<0.000000e+00> : vector<8xf32>
    %11 = vector.multi_reduction <add>, %10, %cst_4 [1] : vector<8x32xf32> to vector<8xf32>
    %12 = vector.shape_cast %11 : vector<8xf32> to vector<8x1xf32>
    %cst_5 = arith.constant 1.000000e-24 : f32
    %13 = vector.broadcast %cst_5 : f32 to vector<8x1xf32>
    %14 = arith.maximumf %12, %13 : vector<8x1xf32>
    %15 = math.rsqrt %14 : vector<8x1xf32>
    %16 = vector.broadcast %15 : vector<8x1xf32> to vector<8x32xf32>
    %17 = arith.mulf %1, %16 : vector<8x32xf32>
    %cst_6 = arith.constant 1.41421354 : f32
    %18 = vector.broadcast %cst_6 : f32 to vector<8x32xf32>
    %19 = arith.mulf %9, %18 : vector<8x32xf32>
    %20 = arith.truncf %19 : vector<8x32xf32> to vector<8x32xbf16>
    %c0_7 = arith.constant 0 : index
    %c0_8 = arith.constant 0 : index
    %c0_9 = arith.constant 0 : index
    %21 = vector.load %arg3[%c0_7, %c0_8, %c0_9] : memref<2x8x32xbf16, #tpu.memory_space<vmem>>, vector<1x8x32xbf16>
    %22 = vector.shape_cast %21 : vector<1x8x32xbf16> to vector<8x32xbf16>
    %23 = vector.shape_cast %20 : vector<8x32xbf16> to vector<1x8x32xbf16>
    tpu.vector_store %arg3[%c0_7, %c0_8, %c0_9], %23 {strides = array<i32>} : memref<2x8x32xbf16, #tpu.memory_space<vmem>>, vector<1x8x32xbf16>,
    %cst_10 = arith.constant 1.41421354 : f32
    %24 = vector.broadcast %cst_10 : f32 to vector<8x32xf32>
    %25 = arith.mulf %17, %24 : vector<8x32xf32>
    %26 = arith.truncf %25 : vector<8x32xf32> to vector<8x32xbf16>
    %c1 = arith.constant 1 : index
    %c0_11 = arith.constant 0 : index
    %c0_12 = arith.constant 0 : index
    %27 = vector.load %arg3[%c1, %c0_11, %c0_12] : memref<2x8x32xbf16, #tpu.memory_space<vmem>>, vector<1x8x32xbf16>
    %28 = vector.shape_cast %27 : vector<1x8x32xbf16> to vector<8x32xbf16>
    %29 = vector.shape_cast %26 : vector<8x32xbf16> to vector<1x8x32xbf16>
    tpu.vector_store %arg3[%c1, %c0_11, %c0_12], %29 {strides = array<i32>} : memref<2x8x32xbf16, #tpu.memory_space<vmem>>, vector<1x8x32xbf16>,
    %30 = arith.mulf %9, %17 : vector<8x32xf32>
    %cst_13 = arith.constant dense<0.000000e+00> : vector<8xf32>
    %31 = vector.multi_reduction <add>, %30, %cst_13 [1] : vector<8x32xf32> to vector<8xf32>
    %cst_14 = arith.constant 2.000000e+00 : f32
    %32 = vector.broadcast %cst_14 : f32 to vector<8xf32>
    %33 = arith.mulf %31, %32 : vector<8xf32>
    %34 = vector.shape_cast %33 : vector<8xf32> to vector<1x8xf32>
    %c0_15 = arith.constant 0 : index
    %c0_16 = arith.constant 0 : index
    %35 = vector.load %arg4[%c0_15, %c0_16] : memref<1x8xf32, #tpu.memory_space<vmem>>, vector<1x8xf32>
    tpu.vector_store %arg4[%c0_15, %c0_16], %34 {strides = array<i32>} : memref<1x8xf32, #tpu.memory_space<vmem>>, vector<1x8xf32>,
    return
  }
  func.func @transform_0(%arg0: i32) -> (i32, i32) {
    %c0_i32 = arith.constant 0 : i32
    %c0_i32_0 = arith.constant 0 : i32
    return %arg0, %c0_i32 : i32, i32
  }
  func.func @transform_1(%arg0: i32) -> (i32, i32) {
    %c0_i32 = arith.constant 0 : i32
    %c0_i32_0 = arith.constant 0 : i32
    return %arg0, %c0_i32 : i32, i32
  }
  func.func @transform_2(%arg0: i32) -> (i32, i32, i32) {
    %c0_i32 = arith.constant 0 : i32
    %c0_i32_0 = arith.constant 0 : i32
    %c0_i32_1 = arith.constant 0 : i32
    return %c0_i32, %arg0, %c0_i32_0 : i32, i32, i32
  }
  func.func @transform_3(%arg0: i32) -> (i32, i32) {
    %c0_i32 = arith.constant 0 : i32
    %c0_i32_0 = arith.constant 0 : i32
    return %c0_i32, %arg0 : i32, i32
  }
}

</mosaic_0001>

<bundles_post_ra>
// kernel: tpu_custom_call.1
= control target key start
LH: loop header
LB: loop body
LE: loop exit
PB: predicated region body
PF: predicated region fallthrough
CT: control target
= control target key end

     0   :  { %9 = vsyncpa [#allocation3], 0  ;;  %s291_s0 = inlined_call_operand.hbm [shape: f32[8,32], index: 0, kind: input, shape index: {}]   ;;  %s292_s1 = inlined_call_operand.hbm [shape: f32[8,32], index: 1, kind: input, shape index: {}]   ;;  %s293_s2 = inlined_call_operand.hbm [shape: bf16[2,8,32], index: 2, kind: output, shape index: {0}]   ;;  %s294_s3 = inlined_call_operand.hbm [shape: f32[1,8], index: 3, kind: output, shape index: {1}]  }
   0x1   :  { %10 = vsyncpa [#allocation6], 0 }
   0x2   :  { %11 = vsyncpa [#allocation4], 0 }
   0x3   :  { %12 = vsyncpa [#allocation9], 0  ;;  %s18_s14 = sshll.u32 %s291_s0, 4  ;;  %s248_s15 = smov [#allocation2]   ;;  %s19_s14 = int_to_ptr.hbm [resolvable:$true] %s18_s14 }
   0x4   :  { %s20_s16 = sshll.u32 %s248_s15, 4  ;;  %s29_s19 = sshll.u32 %s292_s1, 4  ;;  %s21_s16 = int_to_ptr.vmem [resolvable:$true] %s20_s16  ;;  %s30_s19 = int_to_ptr.hbm [resolvable:$true] %s29_s19 }
   0x5   :  { %23 = dma.hbm_to_vmem [thread:$0]  %s19_s14, 128, %s21_s16, [#allocation3]  }
   0x6   :  { %s249_s20 = smov [#allocation5]  }
   0x7   :  { %s31_s21 = sshll.u32 %s249_s20, 4  ;;  %s32_s21 = int_to_ptr.vmem [resolvable:$true] %s31_s21 }
   0x8   :  { %34 = dma.hbm_to_vmem [thread:$0]  %s30_s19, 128, %s32_s21, [#allocation6]  }
   0x9   :  { %240 = dma.done.wait [#allocation3], 128  }
   0xa   :  { %241 = vsyncadd [#allocation3], 4294967168 }
   0xb   :  { %242 = dma.done.wait [#allocation6], 128  }
   0xc   :  { %243 = vsyncadd [#allocation6], 4294967168  ;;  %v43_v0 = vld [vmem:[#allocation2] sm:$0xff]  ;;  %vm46_vm0 = vcmask 261120   ;;  %v44_v2 = vld [vmem:[#allocation5] sm:$0xff]  ;;  %vm80_vm5 = vcmask 257024   ;;  %v92_v32 = vlaneseq }
   0xd   :  { %v45_v1 = vmul.f32 %v43_v0, %v43_v0  ;;  %v62_v4 = vmul.f32 %v44_v2, %v44_v2  ;;  %s250_s0 = smov [#allocation7]   ;;  %s104_s24 = sshll.u32 %s293_s2, 4  ;;  %vm96_vm8 = vcmask 57344   ;;  %s105_s24 = int_to_ptr.hbm [resolvable:$true] %s104_s24 }
   0xe   :  { %s102_s1 = sshll.u32 %s250_s0, 4  ;;  %s251_s25 = smov 64   ;;  %v93_v33 = vand.u32 127, %v92_v32  ;;  %s103_s1 = int_to_ptr.vmem [resolvable:$true] %s102_s1 }
   0xf   :  { %v47_v3 = vsel %vm46_vm0, %v45_v1, 0.0  ;;  %v63_v5 = vsel %vm46_vm0, %v62_v4, 0.0  ;;  %s252_s26 = smov 4   ;;  %s253_s27 = smov [#allocation8]  }
  0x10   :  { %48 = vadd.xlane.f32.xlu0 %v47_v3  ;;  %s116_s28 = sshll.u32 %s253_s27, 4  ;;  %s118_s30 = sshll.u32 %s294_s3, 4  ;;  %s117_s28 = int_to_ptr.vmem [resolvable:$true] %s116_s28  ;;  %s119_s30 = int_to_ptr.hbm [resolvable:$true] %s118_s30 }
  0x18   :  { %64 = vadd.xlane.f32.xlu0 %v63_v5 }
  0x83   :  { %v49_v6 = vpop.xlane.xlu0 %48 }
  0x84   :  { %v50_v7 = vmax.f32 %v49_v6, 1e-24 }
  0x86   :  { %140 = vrsqrt.f32 %v50_v7  ;;  %vm57_vm2 = vweird.f32 %v50_v7 }
  0x8b   :  { %v65_v8 = vpop.xlane.xlu0 %64 }
  0x8c   :  { %v141_v9 = vpop.eup %140  ;;  %v66_v10 = vmax.f32 %v65_v8, 1e-24 }
  0x8d   :  { %v52_v11 = vmul.f32 %v141_v9, %v50_v7  ;;  %vm58_vm1 = vweird.f32 %v141_v9 }
  0x8e   :  { %142 = vrsqrt.f32 %v66_v10  ;;  %vm59_vm3 = vmor %vm57_vm2, %vm58_vm1  ;;  %vm73_vm6 = vweird.f32 %v66_v10 }
  0x8f   :  { %v53_v12 = vmul.f32 %v141_v9, %v52_v11 }
  0x91   :  { %v54_v13 = vmul.f32 0.5, %v53_v12 }
  0x93   :  { %v55_v14 = vsub.f32 1.5, %v54_v13 }
  0x94   :  { %v143_v15 = vpop.eup %142 }
  0x95   :  { %v68_v16 = vmul.f32 %v143_v15, %v66_v10  ;;  %v56_v17 = vmul.f32 %v141_v9, %v55_v14  ;;  %vm74_vm4 = vweird.f32 %v143_v15 }
  0x96   :  { %vm75_vm7 = vmor %vm73_vm6, %vm74_vm4 }
  0x97   :  { %v69_v18 = vmul.f32 %v143_v15, %v68_v16  ;;  %v60_v19 = vsel %vm59_vm3, %v141_v9, %v56_v17 }
  0x98   :  { %v61_v20 = vmul.f32 %v60_v19, %v43_v0 }
  0x99   :  { %v70_v21 = vmul.f32 0.5, %v69_v18 }
  0x9a   :  { %v78_v22 = vmul.f32 1.4142135, %v61_v20 }
  0x9b   :  { %v71_v23 = vsub.f32 1.5, %v70_v21 }
  0x9c   :  { %v79_v24 = vpack.c.bf16 %v78_v22, %v78_v22 }
  0x9d   :  { %v72_v25 = vmul.f32 %v143_v15, %v71_v23 }
  0x9e   :  { %81 = vst.msk [vmem:[#allocation7] sm:$0xf] %vm80_vm5, %v79_v24 }
  0x9f   :  { %v76_v26 = vsel %vm75_vm7, %v143_v15, %v72_v25 }
  0xa0   :  { %v77_v27 = vmul.f32 %v76_v26, %v44_v2 }
  0xa2   :  { %v86_v28 = vmul.f32 %v77_v27, %v61_v20  ;;  %v82_v29 = vmul.f32 1.4142135, %v77_v27 }
  0xa4   :  { %v87_v30 = vsel %vm46_vm0, %v86_v28, 0.0  ;;  %v83_v31 = vpack.c.bf16 %v82_v29, %v82_v29 }
  0xa5   :  { %88 = vadd.xlane.f32.xlu1 %v87_v30 }
  0xa6   :  { %85 = vst.msk [vmem:[#allocation7 + $0x4] sm:$0xf] %vm80_vm5, %v83_v31 }
  0xa7   :  { %110 = dma.vmem_to_hbm [thread:$0]  %s103_s1, 128, %s105_s24, [#allocation4], %s251_s25, %s251_s25, %s252_s26  }
 0x118   :  { %v89_v34 = vpop.xlane.xlu1 %88 }
 0x119   :  { %v90_v35 = vmul.f32 2.0, %v89_v34 }
 0x11b   :  { %v94_v36 = vperm.slane %v90_v35, %v93_v33 }
 0x11d   :  { %97 = vst.msk [vmem:[#allocation8] sm:$0x1] %vm96_vm8, %v94_v36 }
 0x11e   :  { %121 = dma.vmem_to_hbm [thread:$0]  %s117_s28, 16, %s119_s30, [#allocation9]  }
 0x11f   :  { %244 = dma.done.wait [#allocation4], 128  }
 0x120   :  { %245 = vsyncadd [#allocation4], 4294967168 }
 0x121   :  { %246 = dma.done.wait [#allocation9], 16  }
 0x122   :  { %247 = vsyncadd [#allocation9], 4294967280 }
 0x123   :  { %130 = vsyncpa [#allocation3], 1 }
 0x124   :  { %131 = vsyncpa [#allocation6], 1 }
 0x125   :  { %132 = vsyncpa [#allocation4], 1 }
 0x126   :  { %133 = vsyncpa [#allocation9], 1 }

</bundles_post_ra>
